<compile_context>
chip_gen: v7x
topology: tpu7x:2x2x1
jax: 0.10.0
libtpu: 0.0.40
codegen_flags: <defaults>
</compile_context>

<pallas_src>
import functools

import jax
import jax.numpy as jnp
from jax.experimental import pallas as pl
from jax.experimental.pallas import tpu as pltpu


def _round_up(x, m):
    return (x + m - 1) // m * m


def _rnn_kernel(num_layers, hidden_size, dpad, layer_rows,
                combo_ref, h0_ref, rnn_w_ref, head_w_ref,
                out_ref, hid_ref, xbuf_ref):
    f32 = jnp.float32
    H = hidden_size
    L = combo_ref.shape[0]

    if dpad > H:  # keep padded input columns of the layer-output scratch at zero
        xbuf_ref[...] = jnp.zeros(xbuf_ref.shape, f32)

    for l in range(num_layers):                  # layers unrolled (num_layers is tiny)
        base = l * layer_rows
        w_ih = rnn_w_ref[pl.ds(base, dpad), :]            # (Dpad, H), pre-transposed
        w_hh = rnn_w_ref[pl.ds(base + dpad, H), :]        # (H, H),    pre-transposed
        b = rnn_w_ref[pl.ds(base + dpad + H, 1), :]       # (1, H),    b_ih + b_hh fused

        x_layer = combo_ref[...] if l == 0 else xbuf_ref[...]        # (L, Dpad)
        # Input projection for all time steps at once (single MXU pass per layer).
        gi = jnp.dot(x_layer, w_ih, preferred_element_type=f32) + b  # (L, H)

        h = h0_ref[pl.ds(l, 1), :]                        # (1, H)
        for t in range(L):                       # sequential recurrence (L is tiny, unrolled)
            h = jnp.tanh(gi[t:t + 1, :] +
                         jnp.dot(h, w_hh, preferred_element_type=f32))
            xbuf_ref[pl.ds(t, 1), pl.ds(0, H)] = h        # becomes next layer's input / rnn output
        hid_ref[pl.ds(l, 1), :] = h                       # final hidden state of layer l

    rnn_out = xbuf_ref[...][:, :H]                        # (L, H)   last layer's outputs
    hidden_out = hid_ref[...]                             # (num_layers, H) == (L, H)

    # Output head: fc fused into o2o (precomputed on host), pre-transposed, bias row appended.
    w_h = head_w_ref[pl.ds(0, H), :]                      # (H, Cp)
    w_x = head_w_ref[pl.ds(H, H), :]                      # (H, Cp)
    b_h = head_w_ref[pl.ds(2 * H, 1), :]                  # (1, Cp)  (-1e30 in padded lanes)
    logits = (jnp.dot(hidden_out, w_h, preferred_element_type=f32)
              + jnp.dot(rnn_out, w_x, preferred_element_type=f32) + b_h)

    # TODO(synk): nn.Dropout is stochastic in train mode; implemented as identity (eval semantics).

    # LogSoftmax(dim=1); padded lanes carry -1e30 so they do not perturb max / sum-exp.
    m = jnp.max(logits, axis=1, keepdims=True)
    lse = m + jnp.log(jnp.sum(jnp.exp(logits - m), axis=1, keepdims=True))
    out_ref[...] = logits - lse


def rnn_forward(category, x, hidden, params):
    L = x.shape[0]
    num_layers, H = hidden.shape
    C = x.shape[1]                      # num_classes == input_size
    assert L == num_layers, "torch.cat((hidden, out), 1) requires seq_len == num_layers"

    layer_rows = params["rnn_w"].shape[0] // num_layers   # static (from shapes)
    dpad = layer_rows - H - 8
    cpad = params["head_w"].shape[1]
    d_in = category.shape[1] + x.shape[1]

    combo = jnp.concatenate([category, x], axis=1)        # (L, D_in)  -- glue in plain JAX
    combo = jnp.pad(combo, ((0, 0), (0, dpad - d_in)))    # zero-pad to Dpad

    kernel = functools.partial(_rnn_kernel, num_layers, H, dpad, layer_rows)
    vmem = pl.BlockSpec(memory_space=pltpu.MemorySpace.VMEM)
    out, hid = pl.pallas_call(
        kernel,
        out_shape=(jax.ShapeDtypeStruct((L, cpad), jnp.float32),
                   jax.ShapeDtypeStruct((num_layers, H), jnp.float32)),
        in_specs=[vmem] * 4,
        out_specs=(vmem, vmem),
        scratch_shapes=[pltpu.VMEM((L, dpad), jnp.float32)],
    )(combo, hidden, params["rnn_w"], params["head_w"])
    return out[:, :C], hid


def rnn_reference(category, x, hidden, raw):
    """Pure-JAX reference mirroring torch.nn.RNN(tanh) / Linear / LogSoftmax semantics."""
    num_layers, H = hidden.shape
    L = x.shape[0]
    x_layer = jnp.concatenate([category, x], axis=1)
    finals = []
    for l in range(num_layers):
        w_ih, w_hh = raw["w_ih"][l], raw["w_hh"][l]
        b_ih, b_hh = raw["b_ih"][l], raw["b_hh"][l]
        h = hidden[l:l + 1]
        outs = []
        for t in range(L):
            h = jnp.tanh(x_layer[t:t + 1] @ w_ih.T + b_ih + h @ w_hh.T + b_hh)
            outs.append(h)
        x_layer = jnp.concatenate(outs, axis=0)
        finals.append(h)
    hidden_out = jnp.concatenate(finals, axis=0)
    out_fc = x_layer @ raw["w_fc"].T + raw["b_fc"]
    logits = jnp.concatenate([hidden_out, out_fc], axis=1) @ raw["w_o2o"].T + raw["b_o2o"]
    return jax.nn.log_softmax(logits, axis=1), hidden_out


def init_params(key, input_size, hidden_size, num_layers, n_categories, cpad=128):
    C = input_size
    H = hidden_size
    assert H % 8 == 0
    d_in = input_size + n_categories
    dpad = _round_up(max(d_in, H), 8)
    layer_rows = dpad + H + 8

    keys = iter(jax.random.split(key, 4 * num_layers + 4))

    def u(k, shape, bound):
        return jax.random.uniform(k, shape, jnp.float32, -bound, bound)

    bound = 1.0 / (H ** 0.5)
    raw = dict(w_ih=[], w_hh=[], b_ih=[], b_hh=[])
    blocks = []
    for l in range(num_layers):
        in_dim = d_in if l == 0 else H
        w_ih = u(next(keys), (H, in_dim), bound)
        w_hh = u(next(keys), (H, H), bound)
        b_ih = u(next(keys), (1, H), bound)
        b_hh = u(next(keys), (1, H), bound)
        raw["w_ih"].append(w_ih); raw["w_hh"].append(w_hh)
        raw["b_ih"].append(b_ih); raw["b_hh"].append(b_hh)
        w_ih_t = jnp.pad(w_ih.T, ((0, dpad - in_dim), (0, 0)))      # (Dpad, H)
        bias = jnp.pad(b_ih + b_hh, ((0, 7), (0, 0)))               # (8, H), row 0 = fused bias
        blocks.append(jnp.concatenate([w_ih_t, w_hh.T, bias], axis=0))
    rnn_w = jnp.concatenate(blocks, axis=0)                         # (num_layers*layer_rows, H)

    w_fc = u(next(keys), (C, H), 1.0 / (H ** 0.5))
    b_fc = u(next(keys), (1, C), 1.0 / (H ** 0.5))
    bound_o = 1.0 / ((H + C) ** 0.5)
    w_o2o = u(next(keys), (C, H + C), bound_o)
    b_o2o = u(next(keys), (1, C), bound_o)
    raw.update(w_fc=w_fc, b_fc=b_fc, w_o2o=w_o2o, b_o2o=b_o2o)

    # Fuse fc into o2o:  logits = hidden @ W_h + rnn_out @ W_x + b_head
    w_h = w_o2o[:, :H].T                                            # (H, C)
    w_x = (w_o2o[:, H:] @ w_fc).T                                   # (H, C)
    b_head = b_fc @ w_o2o[:, H:].T + b_o2o                          # (1, C)
    neg = jnp.full((1, cpad - C), -1e30, jnp.float32)
    head_w = jnp.concatenate([
        jnp.pad(w_h, ((0, 0), (0, cpad - C))),
        jnp.pad(w_x, ((0, 0), (0, cpad - C))),
        jnp.concatenate([b_head, neg], axis=1),
        jnp.zeros((7, cpad), jnp.float32),
    ], axis=0)                                                      # (2H+8, cpad)

    return dict(rnn_w=rnn_w, head_w=head_w), raw


if __name__ == "__main__":
    # Small shapes consistent with the module's forward.
    input_size = 8          # num_classes == input_size
    n_categories = 4
    hidden_size = 32
    num_layers = 2
    seq_len = num_layers    # required by torch.cat((hidden, out), 1)

    root = jax.random.PRNGKey(0)
    kc, kx, kh, kp = jax.random.split(root, 4)
    category = jax.random.normal(kc, (seq_len, n_categories), jnp.float32)
    x = jax.random.normal(kx, (seq_len, input_size), jnp.float32)
    hidden = 0.1 * jax.random.normal(kh, (num_layers, hidden_size), jnp.float32)

    params, raw = init_params(kp, input_size, hidden_size, num_layers, n_categories)

    out, hid = jax.block_until_ready(
        jax.jit(rnn_forward)(category, x, hidden, params))

    ref_out, ref_hid = rnn_reference(category, x, hidden, raw)
    assert out.shape == (seq_len, input_size) and hid.shape == (num_layers, hidden_size)
    assert jnp.allclose(out, ref_out, atol=1e-4, rtol=1e-4)
    assert jnp.allclose(hid, ref_hid, atol=1e-4, rtol=1e-4)

    print("KERNEL_OK")
</pallas_src>

<mosaic_0001>
module attributes {stable_mosaic.version = 11 : i64} {
  func.func @_rnn_kernel(%arg0: memref<2x32xf32, #tpu.memory_space<vmem>>, %arg1: memref<2x32xf32, #tpu.memory_space<vmem>>, %arg2: memref<144x32xf32, #tpu.memory_space<vmem>>, %arg3: memref<72x128xf32, #tpu.memory_space<vmem>>, %arg4: memref<2x128xf32, #tpu.memory_space<vmem>>, %arg5: memref<2x32xf32, #tpu.memory_space<vmem>>, %arg6: memref<2x32xf32, #tpu.memory_space<vmem>>) attributes {dimension_semantics = [], scalar_prefetch = 0 : i64, scratch_operands = 1 : i64, tpu.core_type = #tpu.core_type<tc>} {
    %c0 = arith.constant 0 : index
    %c0_0 = arith.constant 0 : index
    %0 = vector.load %arg2[%c0, %c0_0] : memref<144x32xf32, #tpu.memory_space<vmem>>, vector<32x32xf32>
    %c32 = arith.constant 32 : index
    %c0_1 = arith.constant 0 : index
    %1 = vector.load %arg2[%c32, %c0_1] : memref<144x32xf32, #tpu.memory_space<vmem>>, vector<32x32xf32>
    %c64 = arith.constant 64 : index
    %c0_2 = arith.constant 0 : index
    %2 = vector.load %arg2[%c64, %c0_2] : memref<144x32xf32, #tpu.memory_space<vmem>>, vector<1x32xf32>
    %c0_3 = arith.constant 0 : index
    %c0_4 = arith.constant 0 : index
    %3 = vector.load %arg0[%c0_3, %c0_4] : memref<2x32xf32, #tpu.memory_space<vmem>>, vector<2x32xf32>
    %cst = arith.constant dense<0.000000e+00> : vector<2x32xf32>
    %4 = tpu.matmul %3, %0, %cst {dimension_numbers = #tpu.dot_dimension_numbers<[1], [0], [0], [1], [0, 0, 1, 1], [], []>} : vector<2x32xf32>, vector<32x32xf32>, vector<2x32xf32> -> vector<2x32xf32>
    %5 = vector.broadcast %2 : vector<1x32xf32> to vector<2x32xf32>
    %6 = arith.addf %4, %5 : vector<2x32xf32>
    %c0_5 = arith.constant 0 : index
    %c0_6 = arith.constant 0 : index
    %7 = vector.load %arg1[%c0_5, %c0_6] : memref<2x32xf32, #tpu.memory_space<vmem>>, vector<1x32xf32>
    %8 = vector.extract_strided_slice %6 {offsets = [0, 0], sizes = [1, 32], strides = [1, 1]} : vector<2x32xf32> to vector<1x32xf32>
    %cst_7 = arith.constant dense<0.000000e+00> : vector<1x32xf32>
    %9 = tpu.matmul %7, %1, %cst_7 {dimension_numbers = #tpu.dot_dimension_numbers<[1], [0], [0], [1], [0, 0, 1, 1], [], []>} : vector<1x32xf32>, vector<32x32xf32>, vector<1x32xf32> -> vector<1x32xf32>
    %10 = arith.addf %8, %9 : vector<1x32xf32>
    %11 = math.tanh %10 : vector<1x32xf32>
    %c0_8 = arith.constant 0 : index
    %c0_9 = arith.constant 0 : index
    %12 = vector.load %arg6[%c0_8, %c0_9] : memref<2x32xf32, #tpu.memory_space<vmem>>, vector<1x32xf32>
    tpu.vector_store %arg6[%c0_8, %c0_9], %11 {strides = array<i32>} : memref<2x32xf32, #tpu.memory_space<vmem>>, vector<1x32xf32>,
    %13 = vector.extract_strided_slice %6 {offsets = [1, 0], sizes = [1, 32], strides = [1, 1]} : vector<2x32xf32> to vector<1x32xf32>
    %cst_10 = arith.constant dense<0.000000e+00> : vector<1x32xf32>
    %14 = tpu.matmul %11, %1, %cst_10 {dimension_numbers = #tpu.dot_dimension_numbers<[1], [0], [0], [1], [0, 0, 1, 1], [], []>} : vector<1x32xf32>, vector<32x32xf32>, vector<1x32xf32> -> vector<1x32xf32>
    %15 = arith.addf %13, %14 : vector<1x32xf32>
    %16 = math.tanh %15 : vector<1x32xf32>
    %c1 = arith.constant 1 : index
    %c0_11 = arith.constant 0 : index
    %17 = vector.load %arg6[%c1, %c0_11] : memref<2x32xf32, #tpu.memory_space<vmem>>, vector<1x32xf32>
    tpu.vector_store %arg6[%c1, %c0_11], %16 {strides = array<i32>} : memref<2x32xf32, #tpu.memory_space<vmem>>, vector<1x32xf32>,
    %c0_12 = arith.constant 0 : index
    %c0_13 = arith.constant 0 : index
    %18 = vector.load %arg5[%c0_12, %c0_13] : memref<2x32xf32, #tpu.memory_space<vmem>>, vector<1x32xf32>
    tpu.vector_store %arg5[%c0_12, %c0_13], %16 {strides = array<i32>} : memref<2x32xf32, #tpu.memory_space<vmem>>, vector<1x32xf32>,
    %c72 = arith.constant 72 : index
    %c0_14 = arith.constant 0 : index
    %19 = vector.load %arg2[%c72, %c0_14] : memref<144x32xf32, #tpu.memory_space<vmem>>, vector<32x32xf32>
    %c104 = arith.constant 104 : index
    %c0_15 = arith.constant 0 : index
    %20 = vector.load %arg2[%c104, %c0_15] : memref<144x32xf32, #tpu.memory_space<vmem>>, vector<32x32xf32>
    %c136 = arith.constant 136 : index
    %c0_16 = arith.constant 0 : index
    %21 = vector.load %arg2[%c136, %c0_16] : memref<144x32xf32, #tpu.memory_space<vmem>>, vector<1x32xf32>
    %c0_17 = arith.constant 0 : index
    %c0_18 = arith.constant 0 : index
    %22 = vector.load %arg6[%c0_17, %c0_18] : memref<2x32xf32, #tpu.memory_space<vmem>>, vector<2x32xf32>
    %cst_19 = arith.constant dense<0.000000e+00> : vector<2x32xf32>
    %23 = tpu.matmul %22, %19, %cst_19 {dimension_numbers = #tpu.dot_dimension_numbers<[1], [0], [0], [1], [0, 0, 1, 1], [], []>} : vector<2x32xf32>, vector<32x32xf32>, vector<2x32xf32> -> vector<2x32xf32>
    %24 = vector.broadcast %21 : vector<1x32xf32> to vector<2x32xf32>
    %25 = arith.addf %23, %24 : vector<2x32xf32>
    %c1_20 = arith.constant 1 : index
    %c0_21 = arith.constant 0 : index
    %26 = vector.load %arg1[%c1_20, %c0_21] : memref<2x32xf32, #tpu.memory_space<vmem>>, vector<1x32xf32>
    %27 = vector.extract_strided_slice %25 {offsets = [0, 0], sizes = [1, 32], strides = [1, 1]} : vector<2x32xf32> to vector<1x32xf32>
    %cst_22 = arith.constant dense<0.000000e+00> : vector<1x32xf32>
    %28 = tpu.matmul %26, %20, %cst_22 {dimension_numbers = #tpu.dot_dimension_numbers<[1], [0], [0], [1], [0, 0, 1, 1], [], []>} : vector<1x32xf32>, vector<32x32xf32>, vector<1x32xf32> -> vector<1x32xf32>
    %29 = arith.addf %27, %28 : vector<1x32xf32>
    %30 = math.tanh %29 : vector<1x32xf32>
    %c0_23 = arith.constant 0 : index
    %c0_24 = arith.constant 0 : index
    %31 = vector.load %arg6[%c0_23, %c0_24] : memref<2x32xf32, #tpu.memory_space<vmem>>, vector<1x32xf32>
    tpu.vector_store %arg6[%c0_23, %c0_24], %30 {strides = array<i32>} : memref<2x32xf32, #tpu.memory_space<vmem>>, vector<1x32xf32>,
    %32 = vector.extract_strided_slice %25 {offsets = [1, 0], sizes = [1, 32], strides = [1, 1]} : vector<2x32xf32> to vector<1x32xf32>
    %cst_25 = arith.constant dense<0.000000e+00> : vector<1x32xf32>
    %33 = tpu.matmul %30, %20, %cst_25 {dimension_numbers = #tpu.dot_dimension_numbers<[1], [0], [0], [1], [0, 0, 1, 1], [], []>} : vector<1x32xf32>, vector<32x32xf32>, vector<1x32xf32> -> vector<1x32xf32>
    %34 = arith.addf %32, %33 : vector<1x32xf32>
    %35 = math.tanh %34 : vector<1x32xf32>
    %c1_26 = arith.constant 1 : index
    %c0_27 = arith.constant 0 : index
    %36 = vector.load %arg6[%c1_26, %c0_27] : memref<2x32xf32, #tpu.memory_space<vmem>>, vector<1x32xf32>
    tpu.vector_store %arg6[%c1_26, %c0_27], %35 {strides = array<i32>} : memref<2x32xf32, #tpu.memory_space<vmem>>, vector<1x32xf32>,
    %c1_28 = arith.constant 1 : index
    %c0_29 = arith.constant 0 : index
    %37 = vector.load %arg5[%c1_28, %c0_29] : memref<2x32xf32, #tpu.memory_space<vmem>>, vector<1x32xf32>
    tpu.vector_store %arg5[%c1_28, %c0_29], %35 {strides = array<i32>} : memref<2x32xf32, #tpu.memory_space<vmem>>, vector<1x32xf32>,
    %c0_30 = arith.constant 0 : index
    %c0_31 = arith.constant 0 : index
    %38 = vector.load %arg6[%c0_30, %c0_31] : memref<2x32xf32, #tpu.memory_space<vmem>>, vector<2x32xf32>
    %c0_32 = arith.constant 0 : index
    %c0_33 = arith.constant 0 : index
    %39 = vector.load %arg5[%c0_32, %c0_33] : memref<2x32xf32, #tpu.memory_space<vmem>>, vector<2x32xf32>
    %c0_34 = arith.constant 0 : index
    %c0_35 = arith.constant 0 : index
    %40 = vector.load %arg3[%c0_34, %c0_35] : memref<72x128xf32, #tpu.memory_space<vmem>>, vector<32x128xf32>
    %c32_36 = arith.constant 32 : index
    %c0_37 = arith.constant 0 : index
    %41 = vector.load %arg3[%c32_36, %c0_37] : memref<72x128xf32, #tpu.memory_space<vmem>>, vector<32x128xf32>
    %c64_38 = arith.constant 64 : index
    %c0_39 = arith.constant 0 : index
    %42 = vector.load %arg3[%c64_38, %c0_39] : memref<72x128xf32, #tpu.memory_space<vmem>>, vector<1x128xf32>
    %cst_40 = arith.constant dense<0.000000e+00> : vector<2x128xf32>
    %43 = tpu.matmul %39, %40, %cst_40 {dimension_numbers = #tpu.dot_dimension_numbers<[1], [0], [0], [1], [0, 0, 1, 1], [], []>} : vector<2x32xf32>, vector<32x128xf32>, vector<2x128xf32> -> vector<2x128xf32>
    %cst_41 = arith.constant dense<0.000000e+00> : vector<2x128xf32>
    %44 = tpu.matmul %38, %41, %cst_41 {dimension_numbers = #tpu.dot_dimension_numbers<[1], [0], [0], [1], [0, 0, 1, 1], [], []>} : vector<2x32xf32>, vector<32x128xf32>, vector<2x128xf32> -> vector<2x128xf32>
    %45 = arith.addf %43, %44 : vector<2x128xf32>
    %46 = vector.broadcast %42 : vector<1x128xf32> to vector<2x128xf32>
    %47 = arith.addf %45, %46 : vector<2x128xf32>
    %cst_42 = arith.constant dense<0xFF800000> : vector<2xf32>
    %48 = vector.multi_reduction <maximumf>, %47, %cst_42 [1] : vector<2x128xf32> to vector<2xf32>
    %49 = vector.shape_cast %48 : vector<2xf32> to vector<2x1xf32>
    %50 = vector.broadcast %49 : vector<2x1xf32> to vector<2x128xf32>
    %51 = arith.subf %47, %50 : vector<2x128xf32>
    %52 = math.exp %51 : vector<2x128xf32>
    %cst_43 = arith.constant dense<0.000000e+00> : vector<2xf32>
    %53 = vector.multi_reduction <add>, %52, %cst_43 [1] : vector<2x128xf32> to vector<2xf32>
    %54 = vector.shape_cast %53 : vector<2xf32> to vector<2x1xf32>
    %55 = math.log %54 : vector<2x1xf32>
    %56 = arith.addf %49, %55 : vector<2x1xf32>
    %57 = vector.broadcast %56 : vector<2x1xf32> to vector<2x128xf32>
    %58 = arith.subf %47, %57 : vector<2x128xf32>
    %c0_44 = arith.constant 0 : index
    %c0_45 = arith.constant 0 : index
    %59 = vector.load %arg4[%c0_44, %c0_45] : memref<2x128xf32, #tpu.memory_space<vmem>>, vector<2x128xf32>
    tpu.vector_store %arg4[%c0_44, %c0_45], %58 {strides = array<i32>} : memref<2x128xf32, #tpu.memory_space<vmem>>, vector<2x128xf32>,
    return
  }
}

</mosaic_0001>

<bundles_post_ra>
// kernel: rnn_forward.1
= control target key start
LH: loop header
LB: loop body
LE: loop exit
PB: predicated region body
PF: predicated region fallthrough
CT: control target
= control target key end

     0   :  { %11 = vsyncpa [#allocation4], 0  ;;  %v969_v3 = vmov 0.0|0.0   ;;  %vm970_vm0 = vmmov 0   ;;  %v971_v11 = vmov 0.0   ;;  %s1164_s0 = inlined_call_operand.vmem [shape: f32[2,32], index: 0, kind: input, shape index: {}]   ;;  %s1165_s1 = inlined_call_operand.vmem [shape: f32[2,32], index: 1, kind: input, shape index: {}]   ;;  %s1166_s2 = inlined_call_operand.vmem [shape: f32[144,32], index: 2, kind: input, shape index: {}]   ;;  %s1167_s3 = inlined_call_operand.vmem [shape: f32[72,128], index: 3, kind: input, shape index: {}]   ;;  %s1168_s4 = inlined_call_operand.hbm [shape: f32[2,128], index: 4, kind: output, shape index: {0}]   ;;  %s1169_s5 = inlined_call_operand.hbm [shape: f32[2,32], index: 5, kind: output, shape index: {1}]  }
   0x1   :  { %v21_v0 = vld [vmem:[%s1166_s2] sm:$0xff]  ;;  %v22_v1 = vld [vmem:[%s1166_s2 + $0x8] sm:$0xff]  ;;  %856 = vmatprep.subr.bf16.mxu0 %v969_v3  ;;  %862 = vmatprep.subr.bf16.mxu1 %v969_v3  ;;  %v23_v6 = vld [vmem:[%s1166_s2 + $0x10] sm:$0xff] }
   0x2   :  { %v25_v2 = vld [vmem:[%s1166_s2 + $0x20] sm:$0xff]  ;;  %v857_v4 = vpack.c.bf16 %v22_v1, %v21_v0  ;;  %v26_v5 = vld [vmem:[%s1166_s2 + $0x28] sm:$0xff]  ;;  %v24_v7 = vld [vmem:[%s1166_s2 + $0x18] sm:$0xff]  ;;  %776 = vmatprep.mubr.msk.f32.mxu0 %vm970_vm0, %v971_v11  ;;  %787 = vmatprep.mubr.msk.f32.mxu1 %vm970_vm0, %v971_v11 }
   0x3   :  { %v863_v8 = vpack.c.bf16 %v26_v5, %v25_v2  ;;  %v27_v9 = vld [vmem:[%s1166_s2 + $0x30] sm:$0xff]  ;;  %v28_v10 = vld [vmem:[%s1166_s2 + $0x38] sm:$0xff]  ;;  %v860_v12 = vpack.c.bf16 %v24_v7, %v23_v6 }
   0x4   :  { %858 = vmatpush3.bf16.msra.mxu0 %v857_v4 }
   0x5   :  { %12 = vsyncpa [#allocation6], 0  ;;  %864 = vmatpush3.bf16.msra.mxu1 %v863_v8  ;;  %859 = vmatprep.subr.bf16.mxu0 %v969_v3  ;;  %v866_v13 = vpack.c.bf16 %v28_v10, %v27_v9  ;;  %v30_v14 = vld [vmem:[%s1164_s0] sm:$0x3]  ;;  %vm35_vm1 = vcmask 261120   ;;  %vm185_vm2 = vcmask 253952  }
   0x6   :  { %865 = vmatprep.subr.bf16.mxu1 %v969_v3  ;;  %v109_v15 = vld [vmem:[%s1165_s1] sm:$0x1]  ;;  %v268_v24 = vld [vmem:[%s1166_s2 + $0x48] sm:$0xff]  ;;  %v269_v25 = vld [vmem:[%s1166_s2 + $0x50] sm:$0xff]  ;;  %vm265_vm3 = vcmask 254977   ;;  %vm674_vm4 = vcmask 1041408  }
   0x7   :  { %v717_v16 = vld [vmem:[%s1166_s2 + $0x40] ss:$0 sm:$0xff]  ;;  %v875_v26 = vpack.c.bf16 %v269_v25, %v268_v24  ;;  %v272_v27 = vld [vmem:[%s1166_s2 + $0x68] sm:$0xff]  ;;  %v273_v28 = vld [vmem:[%s1166_s2 + $0x70] sm:$0xff]  ;;  %s972_s24 = smov [#allocation5]  }
   0x8   :  { %861 = vmatpush3.bf16.msra.mxu0 %v860_v12  ;;  %v881_v29 = vpack.c.bf16 %v273_v28, %v272_v27  ;;  %v270_v30 = vld [vmem:[%s1166_s2 + $0x58] sm:$0xff]  ;;  %v271_v31 = vld [vmem:[%s1166_s2 + $0x60] sm:$0xff]  ;;  %v721_v45 = vld [vmem:[%s1166_s2 + $0x88] ss:$0 sm:$0xff]  ;;  %s705_s25 = sshll.u32 %s972_s24, 4  ;;  %s706_s25 = int_to_ptr.vmem [resolvable:$true] %s705_s25 }
   0x9   :  { %867 = vmatpush3.bf16.msra.mxu1 %v866_v13  ;;  %868 = vmatprep.subr.bf16.mxu0 %v969_v3  ;;  %v274_v32 = vld [vmem:[%s1166_s2 + $0x78] sm:$0xff]  ;;  %v878_v33 = vpack.c.bf16 %v271_v31, %v270_v30  ;;  %v275_v34 = vld [vmem:[%s1166_s2 + $0x80] sm:$0xff]  ;;  %v519_v52 = vld [vmem:[%s1167_s3 + $0x28] sm:$0xff]  ;;  %s921_s26 = scalar_lea.vmem %s706_s25, 32  ;;  %p926_p1 = scmp.lt.s32.totalorder %s706_s25, %s706_s25 }
   0xa   :  { %874 = vmatprep.subr.bf16.mxu1 %v969_v3  ;;  %v884_v35 = vpack.c.bf16 %v275_v34, %v274_v32  ;;  %v355_v36 = vld [vmem:[%s1165_s1 + $0x1] sm:$0x1]  ;;  %v515_v55 = vld [vmem:[%s1167_s3 + $0x8] sm:$0xff]  ;;  %v520_v57 = vld [vmem:[%s1167_s3 + $0x30] sm:$0xff]  ;;  %p922_p0 = scmp.ne.s32.totalorder %s706_s25, %s921_s26  ;;  %p927_p2 = scmp.lt.s32.totalorder %s921_s26, %s921_s26 }
   0xb   :  { %777 = vmatmul.mubr.msk.f32.vlgmr.msra.gmra.mrb[0].mxu0 %vm35_vm1, %v30_v14  ;;  %v518_v51 = vld [vmem:[%s1167_s3 + $0x20] sm:$0xff]  ;;  %v521_v58 = vld [vmem:[%s1167_s3 + $0x38] sm:$0xff]  ;;  %v516_v59 = vld [vmem:[%s1167_s3 + $0x10] sm:$0xff] }
   0xc   :  { %788 = vmatmul.mubr.msk.f32.vlgmr.msra.gmra.mrb[0].mxu1 %vm35_vm1, %v109_v15  ;;  %870 = vmatpush3.bf16.msra.mxu0 %v863_v8  ;;  %v514_v53 = vld [vmem:[%s1167_s3] sm:$0xff]  ;;  %v893_v54 = vpack.c.bf16 %v519_v52, %v518_v51  ;;  %v896_v60 = vpack.c.bf16 %v521_v58, %v520_v57  ;;  %v517_v61 = vld [vmem:[%s1167_s3 + $0x18] sm:$0xff]  ;;  %p928_p3 = por %p927_p2, %p926_p1 }
   0xd   :  { %871 = vmatprep.subr.bf16.mxu0 %v969_v3  ;;  %798 = vmatprep.mubr.msk.f32.mxu0 %vm970_vm0, %v971_v11  ;;  %v899_v56 = vpack.c.bf16 %v515_v55, %v514_v53  ;;  %v902_v62 = vpack.c.bf16 %v517_v61, %v516_v59 }
   0xe   :  { %809 = vmatprep.mubr.msk.f32.mxu1 %vm970_vm0, %v971_v11  ;;  %876 = vmatpush3.bf16.msra.mxu1 %v875_v26  ;;  %p929_p4 = pnand %p928_p3, %p922_p0 }
   0xf   :  { %877 = vmatprep.subr.bf16.mxu1 %v969_v3 }
  0x10   :  { %873 = vmatpush3.bf16.msra.mxu0 %v866_v13 }
  0x11   :  { %880 = vmatprep.subr.bf16.mxu0 %v969_v3 }
  0x12   :  { %879 = vmatpush3.bf16.msra.mxu1 %v878_v33 }
  0x13   :  { %886 = vmatprep.subr.bf16.mxu1 %v969_v3 }
  0xde   :  { %v105_v17 = vpop.f32.mrb[0].mxu0 }
  0xdf   :  { %v106_v18 = vadd.f32 %v717_v16, %v105_v17  ;;  %v778_v19 = vpop.f32.mrb[1].mxu0  ;;  %v179_v20 = vpop.f32.mrb[0].mxu1 }
  0xe0   :  { %v789_v21 = vpop.f32.mrb[1].mxu1 }
  0xe1   :  { %v183_v22 = vadd.f32 %v179_v20, %v106_v18 }
  0xe3   :  { %909 = vtanh.f32 %v183_v22 }
  0xed   :  { %v910_v23 = vpop.eup %909 }
  0xee   :  { %186 = vst.msk [vmem:[#allocation2] sm:$0x1] %vm185_vm2, %v910_v23  ;;  %799 = vmatmul.mubr.msk.f32.vlgmr.msra.gmra.mrb[2].mxu0 %vm35_vm1, %v910_v23 }
  0xef   :  { %820 = vmatprep.mubr.msk.f32.mxu0 %vm970_vm0, %v971_v11  ;;  %882 = vmatpush3.bf16.msra.mxu0 %v881_v29 }
  0xf0   :  { %883 = vmatprep.subr.bf16.mxu0 %v969_v3 }
  0xf3   :  { %885 = vmatpush3.bf16.msra.mxu0 %v884_v35 }
  0xf4   :  { %892 = vmatprep.subr.bf16.mxu0 %v969_v3 }
  0xf6   :  { %821 = vmatmul.mubr.msk.f32.vlgmr.msra.gmra.mrb[4].mxu0 %vm35_vm1, %v355_v36 }
  0xf7   :  { %842 = vmatprep.mubr.msk.f32.mxu0 %vm970_vm0, %v971_v11  ;;  %894 = vmatpush3.bf16.msra.mxu0 %v893_v54 }
  0xf8   :  { %895 = vmatprep.subr.bf16.mxu0 %v969_v3 }
  0xfb   :  { %897 = vmatpush3.bf16.msra.mxu0 %v896_v60 }
 0x1c1   :  { %v256_v37 = vpop.f32.mrb[2].mxu0 }
 0x1c2   :  { %v261_v38 = vrot.slane %v256_v37, 7  ;;  %v800_v39 = vpop.f32.mrb[3].mxu0 }
 0x1c4   :  { %v263_v40 = vadd.f32 %v261_v38, %v106_v18 }
 0x1c6   :  { %911 = vtanh.f32 %v263_v40 }
 0x1c9   :  { %v425_v43 = vpop.f32.mrb[4].mxu0 }
 0x1ca   :  { %v822_v44 = vpop.f32.mrb[5].mxu0 }
 0x1d0   :  { %v912_v41 = vpop.eup %911 }
 0x1d1   :  { %266 = vst.msk [vmem:[#allocation2] sm:$0x2] %vm265_vm3, %v912_v41  ;;  %267 = vst.msk [vmem:[#allocation5 - $0x1] sm:$0x2] %vm265_vm3, %v912_v41 }
 0x1d8   :  { %v277_v42 = vld [vmem:[#allocation2] sm:$0x3] }
 0x1d9   :  { %810 = vmatmul.mubr.msk.f32.vlgmr.msra.gmra.mrb[2].mxu1 %vm35_vm1, %v277_v42 }
 0x1da   :  { %888 = vmatpush3.bf16.msra.mxu1 %v881_v29  ;;  %831 = vmatprep.mubr.msk.f32.mxu1 %vm970_vm0, %v971_v11 }
 0x1db   :  { %889 = vmatprep.subr.bf16.mxu1 %v969_v3 }
 0x1de   :  { %891 = vmatpush3.bf16.msra.mxu1 %v884_v35 }
 0x1df   :  { %898 = vmatprep.subr.bf16.mxu1 %v969_v3 }
 0x2ac   :  { %v351_v46 = vpop.f32.mrb[2].mxu1 }
 0x2ad   :  { %v352_v47 = vadd.f32 %v721_v45, %v351_v46  ;;  %v811_v48 = vpop.f32.mrb[3].mxu1 }
 0x2af   :  { %v429_v49 = vadd.f32 %v425_v43, %v352_v47 }
 0x2b1   :  { %913 = vtanh.f32 %v429_v49 }
 0x2bb   :  { %v914_v50 = vpop.eup %913 }
 0x2bc   :  { %431 = vst.msk [vmem:[#allocation2] sm:$0x1] %vm185_vm2, %v914_v50  ;;  %832 = vmatmul.mubr.msk.f32.vlgmr.msra.gmra.mrb[4].mxu1 %vm35_vm1, %v914_v50 }
 0x2bd   :  { %853 = vmatprep.mubr.msk.f32.mxu1 %vm970_vm0, %v971_v11  ;;  %900 = vmatpush3.bf16.msra.mxu1 %v899_v56 }
 0x2be   :  { %901 = vmatprep.subr.bf16.mxu1 %v969_v3  ;;  %v727_v3 = vld [vmem:[%s1167_s3 + $0x40] ss:$0 sm:$0xff] }
 0x2c1   :  { %903 = vmatpush3.bf16.msra.mxu1 %v902_v62 }
 0x38f   :  { %v501_v63 = vpop.f32.mrb[4].mxu1 }
 0x390   :  { %v506_v0 = vrot.slane %v501_v63, 7  ;;  %v833_v1 = vpop.f32.mrb[5].mxu1 }
 0x392   :  { %v508_v2 = vadd.f32 %v506_v0, %v352_v47 }
 0x394   :  { %915 = vtanh.f32 %v508_v2 }
 0x39e   :  { %v916_v4 = vpop.eup %915 }
 0x39f   :  { %511 = vst.msk [vmem:[#allocation5] sm:$0x2] %vm265_vm3, %v916_v4  ;;  %510 = vst.msk [vmem:[#allocation2] sm:$0x2] %vm265_vm3, %v916_v4 }
 0x3a6   :  { %v512_v5 = vld [vmem:[#allocation2] sm:$0x3]  ;;  %v513_v6 = vld [vmem:[#allocation5] sm:$0x3] }
 0x3a7   :  { %843 = vmatmul.mubr.msk.f32.vlgmr.msra.gmra.mrb[6].mxu0 %vm35_vm1, %v512_v5  ;;  %854 = vmatmul.mubr.msk.f32.vlgmr.msra.gmra.mrb[6].mxu1 %vm35_vm1, %v513_v6 }
 0x47a   :  { %v592_v7 = vpop.f32.mrb[6].mxu0  ;;  %v665_v8 = vpop.f32.mrb[6].mxu1 }
 0x47b   :  { %v666_v9 = vadd.f32 %v665_v8, %v592_v7  ;;  %v844_v10 = vpop.f32.mrb[7].mxu0  ;;  %v855_v11 = vpop.f32.mrb[7].mxu1 }
 0x47d   :  { %v673_v12 = vadd.f32 %v727_v3, %v666_v9 }
 0x47f   :  { %v675_v13 = vsel %vm674_vm4, %v673_v12, -inf }
 0x480   :  { %676 = vmax.xlane.f32.xlu0 %v675_v13 }
 0x50d   :  { %v677_v14 = vpop.xlane.xlu0 %676 }
 0x50e   :  { %v678_v15 = vsub.f32 %v673_v12, %v677_v14 }
 0x510   :  { %v679_v16 = vmul.f32 1.442695, %v678_v15 }
 0x512   :  { %917 = vpow2.f32 %v679_v16 }
 0x51c   :  { %v918_v17 = vpop.eup %917 }
 0x51d   :  { %v681_v18 = vsel %vm674_vm4, %v918_v17, 0.0 }
 0x51e   :  { %682 = vadd.xlane.f32.xlu0 %v681_v18 }
 0x51f   :  { %932 = shalt.err (!%p929_p4)
}
 0x520   :  { %s933_s28 = scalar_lea.hbm %s1169_s5, 32 }
 0x521   :  { %p934_p5 = scmp.ne.s32.totalorder %s1169_s5, %s933_s28  ;;  %p937_p6 = scmp.lt.u32.totalorder %s933_s28, %s1169_s5 }
 0x523   :  { %p939_p7 = pnand %p937_p6, %p934_p5 }
 0x525   :  { %942 = shalt.err (!%p939_p7)
}
 0x526   :  { %708 = dma.vmem_to_hbm [thread:$0]  %s706_s25, 32, %s1169_s5, [#allocation6]  }
 0x527   :  { %s973_s9 = smov [#allocation3]  }
 0x528   :  { %s695_s10 = sshll.u32 %s973_s9, 4  ;;  %s696_s10 = int_to_ptr.vmem [resolvable:$true] %s695_s10 }
 0x529   :  { %s943_s11 = scalar_lea.vmem %s696_s10, 32  ;;  %p948_p9 = scmp.lt.s32.totalorder %s696_s10, %s696_s10 }
 0x52a   :  { %p944_p8 = scmp.ne.s32.totalorder %s696_s10, %s943_s11  ;;  %p949_p10 = scmp.lt.s32.totalorder %s943_s11, %s943_s11 }
 0x52c   :  { %p950_p11 = por %p949_p10, %p948_p9 }
 0x52e   :  { %p951_p12 = pnand %p950_p11, %p944_p8 }
 0x5ab   :  { %v683_v19 = vpop.xlane.xlu0 %682 }
 0x5ac   :  { %919 = vlog2.f32 %v683_v19 }
 0x5b6   :  { %v920_v20 = vpop.eup %919 }
 0x5b7   :  { %v685_v21 = vmul.f32 0.6931472, %v920_v20 }
 0x5b9   :  { %v686_v22 = vadd.f32 %v685_v21, %v677_v14 }
 0x5bb   :  { %v687_v23 = vsub.f32 %v673_v12, %v686_v22 }
 0x5bd   :  { %688 = vst [vmem:[#allocation3] sm:$0x3] %v687_v23 }
 0x5be   :  { %954 = shalt.err (!%p951_p12)
}
 0x5bf   :  { %s955_s5 = scalar_lea.hbm %s1168_s4, 32 }
 0x5c0   :  { %p956_p13 = scmp.ne.s32.totalorder %s1168_s4, %s955_s5  ;;  %p959_p0 = scmp.lt.u32.totalorder %s955_s5, %s1168_s4 }
 0x5c2   :  { %p961_p1 = pnand %p959_p0, %p956_p13 }
 0x5c4   :  { %964 = shalt.err (!%p961_p1)
}
 0x5c5   :  { %698 = dma.vmem_to_hbm [thread:$0]  %s696_s10, 32, %s1168_s4, [#allocation4]  }
 0x5c6   :  { %965 = dma.done.wait [#allocation4], 32  }
 0x5c7   :  { %966 = vsyncadd [#allocation4], 4294967264 }
 0x5c8   :  { %967 = dma.done.wait [#allocation6], 32  }
 0x5c9   :  { %968 = vsyncadd [#allocation6], 4294967264 }
 0x5ca   :  { %715 = vsyncpa [#allocation4], 1 }
 0x5cb   :  { %716 = vsyncpa [#allocation6], 1 }

</bundles_post_ra>
